<compile_context>
chip_gen: v7x
topology: tpu7x:2x2x1
jax: 0.10.0
libtpu: 0.0.40
codegen_flags: <defaults>
</compile_context>

<pallas_src>
import jax
import jax.numpy as jnp
from jax.experimental import pallas as pl
from jax.experimental.pallas import tpu as pltpu

# ---------------- hyper-params (small, consistent with the module) ----------------
NUM_PED       = 10
EMBEDDING_DIM = 16
DOWN_SAMPLES  = 128                              # == num_cells after down-sampling
K             = DOWN_SAMPLES // EMBEDDING_DIM    # conv kernel height / stride = 8
H_DIM         = 32
MLP_DIM       = 8                                # mlp_pre_pool hidden = mlp_dim * 8
H1            = MLP_DIM * 8                      # 64
BOTTLENECK    = 32
NBHD          = 2.0                              # neighborhood_size
LEAKY_SLOPE   = 0.01

# lane-dense padded sizes
E_PAD   = 128
H1_PAD  = 128
OUT_PAD = 128

MAX_ROW_TILE  = 512    # v6e/v7x-friendly tile cap (512 rows ~ 85% of HBM roofline)
MIN_TWO_STEPS = 256    # force >=2 grid steps above this many rows (v7x has 2 TCs)
ROW_ALIGN     = 16     # bf16 operands pack 16 rows per sublane tile


def _round_up(x, m):
    return ((x + m - 1) // m) * m


def _cdiv(a, b):
    return -(-a // b)


def _kernel(scene_x_ref, scene_y_ref, posx_ref, posy_ref, hid_ref,
            cwx_ref, cwy_ref, cb_ref,
            w1a_ref, w1b_ref, b1_ref,
            w2_ref, b2_ref,
            out_ref):
    # scene_x/y : (1, C)        boundary point x / y coordinates
    # pos_x/y   : (T, 1)        pedestrian x / y positions for this row tile
    # hid       : (T, H_DIM)
    # cw_x/y    : (C, E_PAD)    block-structured conv weights, 1/NBHD folded in
    # cb        : (1, E_PAD)    conv bias (real cols only), zeros in padding
    # w1a/w1b   : (E_PAD, H1_PAD) / (H_DIM, H1_PAD)   split+padded W1 (concat fold)
    # w2        : (H1_PAD, OUT_PAD)
    mm = cwx_ref.dtype                                                  # matmul operand dtype

    # rel in f32 (exact clamp), cast only at the MXU inputs
    relx = jnp.clip(scene_x_ref[...] - posx_ref[...], -NBHD, NBHD)      # (T, C)
    rely = jnp.clip(scene_y_ref[...] - posy_ref[...], -NBHD, NBHD)      # (T, C)

    # Conv1d(1,1,(k,2),stride=k) == two lane-dense MXU matmuls with block weights
    emb = (jnp.dot(relx.astype(mm), cwx_ref[...], preferred_element_type=jnp.float32)
           + jnp.dot(rely.astype(mm), cwy_ref[...], preferred_element_type=jnp.float32)
           + cb_ref[...])
    emb = jnp.maximum(emb, LEAKY_SLOPE * emb)                           # LeakyReLU (f32 VPU)

    # mlp_pre_pool: Linear -> ReLU -> Linear -> ReLU (concat folded into split W1)
    h1 = (jnp.dot(emb.astype(mm), w1a_ref[...], preferred_element_type=jnp.float32)
          + jnp.dot(hid_ref[...].astype(mm), w1b_ref[...], preferred_element_type=jnp.float32)
          + b1_ref[...])
    h1 = jnp.maximum(h1, 0.0)
    h2 = jnp.dot(h1.astype(mm), w2_ref[...], preferred_element_type=jnp.float32) + b2_ref[...]
    out_ref[...] = jnp.maximum(h2, 0.0)


def make_static_scene_extractor(conv_w, conv_b, w1, b1, w2, b2, *, use_bf16=True):
    """One-time weight prep + a cached jitted per-call function.

    conv_w: (1,1,k,2) Conv1d weight, conv_b: scalar bias,
    w1: (E+H_DIM, H1), b1: (H1,), w2: (H1, bottleneck), b2: (bottleneck,).
    """
    mm = jnp.bfloat16 if use_bf16 else jnp.float32
    E, Hd = EMBEDDING_DIM, H_DIM
    H1n = w1.shape[1]
    Bn = w2.shape[1]

    # ---- one-time weight preparation (hoisted out of the per-call path) ----
    w_kx = jnp.asarray(conv_w, jnp.float32).reshape(-1, 2) / NBHD        # (k, 2), 1/NBHD folded
    eye = jnp.eye(E, dtype=jnp.float32)
    cwx = jnp.pad(jnp.kron(eye, w_kx[:, 0:1]), ((0, 0), (0, E_PAD - E))).astype(mm)   # (C, 128)
    cwy = jnp.pad(jnp.kron(eye, w_kx[:, 1:2]), ((0, 0), (0, E_PAD - E))).astype(mm)   # (C, 128)
    cb = jnp.zeros((1, E_PAD), jnp.float32).at[:, :E].set(
        jnp.asarray(conv_b, jnp.float32).reshape(()))                                 # (1, 128)

    w1a = jnp.pad(jnp.asarray(w1[:E], jnp.float32),
                  ((0, E_PAD - E), (0, H1_PAD - H1n))).astype(mm)                     # (128, 128)
    w1b = jnp.pad(jnp.asarray(w1[E:], jnp.float32),
                  ((0, 0), (0, H1_PAD - H1n))).astype(mm)                             # (Hd, 128)
    b1p = jnp.pad(jnp.asarray(b1, jnp.float32).reshape(1, -1),
                  ((0, 0), (0, H1_PAD - H1n)))                                        # (1, 128)
    w2p = jnp.pad(jnp.asarray(w2, jnp.float32),
                  ((0, H1_PAD - H1n), (0, OUT_PAD - Bn))).astype(mm)                  # (128, 128)
    b2p = jnp.pad(jnp.asarray(b2, jnp.float32).reshape(1, -1),
                  ((0, 0), (0, OUT_PAD - Bn)))                                        # (1, 128)

    param_bytes = int(sum(int(a.size) * a.dtype.itemsize
                          for a in (cwx, cwy, cb, w1a, w1b, b1p, w2p, b2p)))

    @jax.jit
    def extract(scene, curr_end_pos, curr_hidden):
        C = scene.shape[0]
        P = curr_end_pos.shape[0]

        # Row tiling: pad only to the 16-row sublane boundary, pick the tile to
        # minimize padding, and use >=2 grid steps when there is enough work
        # so both v7x TensorCores get a share of the "parallel" axis.
        P_pad = _round_up(max(P, 1), ROW_ALIGN)
        steps = _cdiv(P_pad, MAX_ROW_TILE)
        if P_pad >= MIN_TWO_STEPS:
            steps = max(steps, 2)
        tile = _round_up(_cdiv(P_pad, steps), ROW_ALIGN)
        P_grid = steps * tile

        # ---- tiny per-call glue (fused inside this jit) ----
        scene_f = jnp.asarray(scene, jnp.float32)
        scene_x = scene_f[:, 0].reshape(1, C)
        scene_y = scene_f[:, 1].reshape(1, C)
        pos = jnp.asarray(curr_end_pos, jnp.float32)
        pos_x, pos_y = pos[:, 0:1], pos[:, 1:2]
        hid = jnp.asarray(curr_hidden, jnp.float32)
        if P_grid != P:
            rpad = ((0, P_grid - P), (0, 0))
            pos_x = jnp.pad(pos_x, rpad)
            pos_y = jnp.pad(pos_y, rpad)
            hid = jnp.pad(hid, rpad)

        flops = 2 * P_grid * (2 * C * E_PAD + E_PAD * H1_PAD + Hd * H1_PAD + H1_PAD * OUT_PAD)
        bytes_accessed = (param_bytes
                          + 4 * 2 * C                       # scene_x + scene_y
                          + 4 * P_grid * (2 + Hd)           # pos columns + hidden (f32)
                          + 4 * P_grid * OUT_PAD)           # output slab (f32)

        bcast = lambda i: (0, 0)
        row = lambda i: (i, 0)

        out = pl.pallas_call(
            _kernel,
            out_shape=jax.ShapeDtypeStruct((P_grid, OUT_PAD), jnp.float32),
            grid=(steps,),
            in_specs=[
                pl.BlockSpec((1, C),            bcast),     # scene_x
                pl.BlockSpec((1, C),            bcast),     # scene_y
                pl.BlockSpec((tile, 1),         row),       # pos_x
                pl.BlockSpec((tile, 1),         row),       # pos_y
                pl.BlockSpec((tile, Hd),        row),       # hidden
                pl.BlockSpec((C, E_PAD),        bcast),     # conv weight (x)
                pl.BlockSpec((C, E_PAD),        bcast),     # conv weight (y)
                pl.BlockSpec((1, E_PAD),        bcast),     # conv bias
                pl.BlockSpec((E_PAD, H1_PAD),   bcast),     # W1a
                pl.BlockSpec((Hd, H1_PAD),      bcast),     # W1b
                pl.BlockSpec((1, H1_PAD),       bcast),     # b1
                pl.BlockSpec((H1_PAD, OUT_PAD), bcast),     # W2
                pl.BlockSpec((1, OUT_PAD),      bcast),     # b2
            ],
            out_specs=pl.BlockSpec((tile, OUT_PAD), row),
            compiler_params=pltpu.CompilerParams(
                dimension_semantics=("parallel",)),
            cost_estimate=pl.CostEstimate(flops=flops, transcendentals=0,
                                          bytes_accessed=bytes_accessed),
        )(scene_x, scene_y, pos_x, pos_y, hid,
          cwx, cwy, cb, w1a, w1b, b1p, w2p, b2p)

        return out[:P, :Bn]

    return extract


# ---------------------------- pure-JAX reference ----------------------------------
def reference(scene, pos, hidden, conv_w, conv_b, w1, b1, w2, b2):
    P = pos.shape[0]
    rel = scene[None, :, :] - pos[:, None, :]                # (P, C, 2)
    rel = jnp.clip(rel, -NBHD, NBHD) / NBHD
    patches = rel.reshape(P, EMBEDDING_DIM, K * 2)
    emb = patches @ conv_w.reshape(-1) + conv_b
    emb = jnp.where(emb >= 0, emb, LEAKY_SLOPE * emb)
    h = jnp.concatenate([emb, hidden], axis=1)
    h1 = jnp.maximum(h @ w1 + b1, 0.0)
    return jnp.maximum(h1 @ w2 + b2, 0.0)


if __name__ == "__main__":
    key = jax.random.PRNGKey(0)
    ks = jax.random.split(key, 9)

    # scene / dynamic inputs
    scene        = jax.random.uniform(ks[0], (DOWN_SAMPLES, 2), jnp.float32, -5.0, 5.0)
    curr_end_pos = jax.random.uniform(ks[1], (NUM_PED, 2), jnp.float32, -5.0, 5.0)
    curr_hidden  = jax.random.normal(ks[2], (NUM_PED, H_DIM), jnp.float32)

    # deterministic synthetic parameters (shapes from __init__)
    conv_w = 0.1 * jax.random.normal(ks[3], (1, 1, K, 2), jnp.float32)   # Conv1d(1,1,(k,2))
    conv_b = 0.1 * jax.random.normal(ks[4], (1,), jnp.float32)
    w1 = 0.1 * jax.random.normal(ks[5], (EMBEDDING_DIM + H_DIM, H1), jnp.float32)
    b1 = 0.1 * jax.random.normal(ks[6], (H1,), jnp.float32)
    w2 = 0.1 * jax.random.normal(ks[7], (H1, BOTTLENECK), jnp.float32)
    b2 = 0.1 * jax.random.normal(ks[8], (BOTTLENECK,), jnp.float32)

    ref = reference(scene, curr_end_pos, curr_hidden, conv_w, conv_b[0], w1, b1, w2, b2)

    # (1) f32 path: all structural folds (kron conv weight, split-W1 concat fold,
    #     zero padding, LeakyReLU-as-max) are exact -> tight tolerance.
    extract_f32 = make_static_scene_extractor(conv_w, conv_b[0], w1, b1, w2, b2,
                                              use_bf16=False)
    out_f32 = jax.block_until_ready(extract_f32(scene, curr_end_pos, curr_hidden))
    assert out_f32.shape == (NUM_PED, BOTTLENECK)
    assert jnp.allclose(out_f32, ref, rtol=1e-3, atol=1e-3), "f32 kernel mismatch vs reference"

    # (2) bf16-operand fast path (f32 accumulation / f32 elementwise): looser
    #     tolerance reflecting bf16 matmul-operand rounding, not a semantic change.
    extract_bf16 = make_static_scene_extractor(conv_w, conv_b[0], w1, b1, w2, b2,
                                               use_bf16=True)
    out_bf16 = jax.block_until_ready(extract_bf16(scene, curr_end_pos, curr_hidden))
    assert out_bf16.shape == (NUM_PED, BOTTLENECK)
    assert jnp.allclose(out_bf16, ref, rtol=2.5e-2, atol=2.5e-2), "bf16 kernel mismatch vs reference"

    print("KERNEL_OK")
</pallas_src>

<mosaic_0001>
module attributes {stable_mosaic.version = 11 : i64} {
  func.func @_kernel(%arg0: i32, %arg1: memref<1x128xf32, #tpu.memory_space<vmem>>, %arg2: memref<1x128xf32, #tpu.memory_space<vmem>>, %arg3: memref<16x1xf32, #tpu.memory_space<vmem>>, %arg4: memref<16x1xf32, #tpu.memory_space<vmem>>, %arg5: memref<16x32xf32, #tpu.memory_space<vmem>>, %arg6: memref<128x128xf32, #tpu.memory_space<vmem>>, %arg7: memref<128x128xf32, #tpu.memory_space<vmem>>, %arg8: memref<1x128xf32, #tpu.memory_space<vmem>>, %arg9: memref<128x128xf32, #tpu.memory_space<vmem>>, %arg10: memref<32x128xf32, #tpu.memory_space<vmem>>, %arg11: memref<1x128xf32, #tpu.memory_space<vmem>>, %arg12: memref<128x128xf32, #tpu.memory_space<vmem>>, %arg13: memref<1x128xf32, #tpu.memory_space<vmem>>, %arg14: memref<16x128xf32, #tpu.memory_space<vmem>>) attributes {dimension_semantics = [#tpu.dimension_semantics<parallel>], iteration_bounds = array<i64: 1>, scalar_prefetch = 0 : i64, scratch_operands = 0 : i64, tpu.core_type = #tpu.core_type<tc>, window_params = [{pipeline_mode = #tpu.pipeline_mode<synchronous>, transform_indices = @transform_0, window_bounds = array<i64: 1, 128>}, {pipeline_mode = #tpu.pipeline_mode<synchronous>, transform_indices = @transform_1, window_bounds = array<i64: 1, 128>}, {transform_indices = @transform_2, window_bounds = array<i64: 16, 1>}, {transform_indices = @transform_3, window_bounds = array<i64: 16, 1>}, {transform_indices = @transform_4, window_bounds = array<i64: 16, 32>}, {pipeline_mode = #tpu.pipeline_mode<synchronous>, transform_indices = @transform_5, window_bounds = array<i64: 128, 128>}, {pipeline_mode = #tpu.pipeline_mode<synchronous>, transform_indices = @transform_6, window_bounds = array<i64: 128, 128>}, {pipeline_mode = #tpu.pipeline_mode<synchronous>, transform_indices = @transform_7, window_bounds = array<i64: 1, 128>}, {pipeline_mode = #tpu.pipeline_mode<synchronous>, transform_indices = @transform_8, window_bounds = array<i64: 128, 128>}, {pipeline_mode = #tpu.pipeline_mode<synchronous>, transform_indices = @transform_9, window_bounds = array<i64: 32, 128>}, {pipeline_mode = #tpu.pipeline_mode<synchronous>, transform_indices = @transform_10, window_bounds = array<i64: 1, 128>}, {pipeline_mode = #tpu.pipeline_mode<synchronous>, transform_indices = @transform_11, window_bounds = array<i64: 128, 128>}, {pipeline_mode = #tpu.pipeline_mode<synchronous>, transform_indices = @transform_12, window_bounds = array<i64: 1, 128>}, {transform_indices = @transform_13, window_bounds = array<i64: 16, 128>}]} {
    %c0 = arith.constant 0 : index
    %c0_0 = arith.constant 0 : index
    %0 = vector.load %arg1[%c0, %c0_0] : memref<1x128xf32, #tpu.memory_space<vmem>>, vector<1x128xf32>
    %c0_1 = arith.constant 0 : index
    %c0_2 = arith.constant 0 : index
    %1 = vector.load %arg3[%c0_1, %c0_2] : memref<16x1xf32, #tpu.memory_space<vmem>>, vector<16x1xf32>
    %2 = vector.broadcast %0 : vector<1x128xf32> to vector<16x128xf32>
    %3 = vector.broadcast %1 : vector<16x1xf32> to vector<16x128xf32>
    %4 = arith.subf %2, %3 : vector<16x128xf32>
    %cst = arith.constant -2.000000e+00 : f32
    %cst_3 = arith.constant 2.000000e+00 : f32
    %5 = vector.broadcast %cst : f32 to vector<16x128xf32>
    %6 = arith.maximumf %5, %4 : vector<16x128xf32>
    %7 = vector.broadcast %cst_3 : f32 to vector<16x128xf32>
    %8 = arith.minimumf %7, %6 : vector<16x128xf32>
    %c0_4 = arith.constant 0 : index
    %c0_5 = arith.constant 0 : index
    %9 = vector.load %arg2[%c0_4, %c0_5] : memref<1x128xf32, #tpu.memory_space<vmem>>, vector<1x128xf32>
    %c0_6 = arith.constant 0 : index
    %c0_7 = arith.constant 0 : index
    %10 = vector.load %arg4[%c0_6, %c0_7] : memref<16x1xf32, #tpu.memory_space<vmem>>, vector<16x1xf32>
    %11 = vector.broadcast %9 : vector<1x128xf32> to vector<16x128xf32>
    %12 = vector.broadcast %10 : vector<16x1xf32> to vector<16x128xf32>
    %13 = arith.subf %11, %12 : vector<16x128xf32>
    %cst_8 = arith.constant -2.000000e+00 : f32
    %cst_9 = arith.constant 2.000000e+00 : f32
    %14 = vector.broadcast %cst_8 : f32 to vector<16x128xf32>
    %15 = arith.maximumf %14, %13 : vector<16x128xf32>
    %16 = vector.broadcast %cst_9 : f32 to vector<16x128xf32>
    %17 = arith.minimumf %16, %15 : vector<16x128xf32>
    %c0_10 = arith.constant 0 : index
    %c0_11 = arith.constant 0 : index
    %18 = vector.load %arg6[%c0_10, %c0_11] : memref<128x128xf32, #tpu.memory_space<vmem>>, vector<128x128xf32>
    %cst_12 = arith.constant dense<0.000000e+00> : vector<16x128xf32>
    %19 = tpu.matmul %8, %18, %cst_12 {dimension_numbers = #tpu.dot_dimension_numbers<[1], [0], [0], [1], [0, 0, 1, 1], [], []>} : vector<16x128xf32>, vector<128x128xf32>, vector<16x128xf32> -> vector<16x128xf32>
    %c0_13 = arith.constant 0 : index
    %c0_14 = arith.constant 0 : index
    %20 = vector.load %arg7[%c0_13, %c0_14] : memref<128x128xf32, #tpu.memory_space<vmem>>, vector<128x128xf32>
    %cst_15 = arith.constant dense<0.000000e+00> : vector<16x128xf32>
    %21 = tpu.matmul %17, %20, %cst_15 {dimension_numbers = #tpu.dot_dimension_numbers<[1], [0], [0], [1], [0, 0, 1, 1], [], []>} : vector<16x128xf32>, vector<128x128xf32>, vector<16x128xf32> -> vector<16x128xf32>
    %22 = arith.addf %19, %21 : vector<16x128xf32>
    %c0_16 = arith.constant 0 : index
    %c0_17 = arith.constant 0 : index
    %23 = vector.load %arg8[%c0_16, %c0_17] : memref<1x128xf32, #tpu.memory_space<vmem>>, vector<1x128xf32>
    %24 = vector.broadcast %23 : vector<1x128xf32> to vector<16x128xf32>
    %25 = arith.addf %22, %24 : vector<16x128xf32>
    %cst_18 = arith.constant 0.00999999977 : f32
    %26 = vector.broadcast %cst_18 : f32 to vector<16x128xf32>
    %27 = arith.mulf %26, %25 : vector<16x128xf32>
    %28 = arith.maximumf %25, %27 : vector<16x128xf32>
    %c0_19 = arith.constant 0 : index
    %c0_20 = arith.constant 0 : index
    %29 = vector.load %arg9[%c0_19, %c0_20] : memref<128x128xf32, #tpu.memory_space<vmem>>, vector<128x128xf32>
    %cst_21 = arith.constant dense<0.000000e+00> : vector<16x128xf32>
    %30 = tpu.matmul %28, %29, %cst_21 {dimension_numbers = #tpu.dot_dimension_numbers<[1], [0], [0], [1], [0, 0, 1, 1], [], []>} : vector<16x128xf32>, vector<128x128xf32>, vector<16x128xf32> -> vector<16x128xf32>
    %c0_22 = arith.constant 0 : index
    %c0_23 = arith.constant 0 : index
    %31 = vector.load %arg5[%c0_22, %c0_23] : memref<16x32xf32, #tpu.memory_space<vmem>>, vector<16x32xf32>
    %c0_24 = arith.constant 0 : index
    %c0_25 = arith.constant 0 : index
    %32 = vector.load %arg10[%c0_24, %c0_25] : memref<32x128xf32, #tpu.memory_space<vmem>>, vector<32x128xf32>
    %cst_26 = arith.constant dense<0.000000e+00> : vector<16x128xf32>
    %33 = tpu.matmul %31, %32, %cst_26 {dimension_numbers = #tpu.dot_dimension_numbers<[1], [0], [0], [1], [0, 0, 1, 1], [], []>} : vector<16x32xf32>, vector<32x128xf32>, vector<16x128xf32> -> vector<16x128xf32>
    %34 = arith.addf %30, %33 : vector<16x128xf32>
    %c0_27 = arith.constant 0 : index
    %c0_28 = arith.constant 0 : index
    %35 = vector.load %arg11[%c0_27, %c0_28] : memref<1x128xf32, #tpu.memory_space<vmem>>, vector<1x128xf32>
    %36 = vector.broadcast %35 : vector<1x128xf32> to vector<16x128xf32>
    %37 = arith.addf %34, %36 : vector<16x128xf32>
    %cst_29 = arith.constant 0.000000e+00 : f32
    %38 = vector.broadcast %cst_29 : f32 to vector<16x128xf32>
    %39 = arith.maximumf %37, %38 : vector<16x128xf32>
    %c0_30 = arith.constant 0 : index
    %c0_31 = arith.constant 0 : index
    %40 = vector.load %arg12[%c0_30, %c0_31] : memref<128x128xf32, #tpu.memory_space<vmem>>, vector<128x128xf32>
    %cst_32 = arith.constant dense<0.000000e+00> : vector<16x128xf32>
    %41 = tpu.matmul %39, %40, %cst_32 {dimension_numbers = #tpu.dot_dimension_numbers<[1], [0], [0], [1], [0, 0, 1, 1], [], []>} : vector<16x128xf32>, vector<128x128xf32>, vector<16x128xf32> -> vector<16x128xf32>
    %c0_33 = arith.constant 0 : index
    %c0_34 = arith.constant 0 : index
    %42 = vector.load %arg13[%c0_33, %c0_34] : memref<1x128xf32, #tpu.memory_space<vmem>>, vector<1x128xf32>
    %43 = vector.broadcast %42 : vector<1x128xf32> to vector<16x128xf32>
    %44 = arith.addf %41, %43 : vector<16x128xf32>
    %cst_35 = arith.constant 0.000000e+00 : f32
    %45 = vector.broadcast %cst_35 : f32 to vector<16x128xf32>
    %46 = arith.maximumf %44, %45 : vector<16x128xf32>
    %c0_36 = arith.constant 0 : index
    %c0_37 = arith.constant 0 : index
    %47 = vector.load %arg14[%c0_36, %c0_37] : memref<16x128xf32, #tpu.memory_space<vmem>>, vector<16x128xf32>
    tpu.vector_store %arg14[%c0_36, %c0_37], %46 {strides = array<i32>} : memref<16x128xf32, #tpu.memory_space<vmem>>, vector<16x128xf32>,
    return
  }
  func.func @transform_0(%arg0: i32) -> (i32, i32) {
    %c0_i32 = arith.constant 0 : i32
    %c0_i32_0 = arith.constant 0 : i32
    %c0_i32_1 = arith.constant 0 : i32
    return %c0_i32, %c0_i32_0 : i32, i32
  }
  func.func @transform_1(%arg0: i32) -> (i32, i32) {
    %c0_i32 = arith.constant 0 : i32
    %c0_i32_0 = arith.constant 0 : i32
    %c0_i32_1 = arith.constant 0 : i32
    return %c0_i32, %c0_i32_0 : i32, i32
  }
  func.func @transform_2(%arg0: i32) -> (i32, i32) {
    %c0_i32 = arith.constant 0 : i32
    %c0_i32_0 = arith.constant 0 : i32
    return %arg0, %c0_i32 : i32, i32
  }
  func.func @transform_3(%arg0: i32) -> (i32, i32) {
    %c0_i32 = arith.constant 0 : i32
    %c0_i32_0 = arith.constant 0 : i32
    return %arg0, %c0_i32 : i32, i32
  }
  func.func @transform_4(%arg0: i32) -> (i32, i32) {
    %c0_i32 = arith.constant 0 : i32
    %c0_i32_0 = arith.constant 0 : i32
    return %arg0, %c0_i32 : i32, i32
  }
  func.func @transform_5(%arg0: i32) -> (i32, i32) {
    %c0_i32 = arith.constant 0 : i32
    %c0_i32_0 = arith.constant 0 : i32
    %c0_i32_1 = arith.constant 0 : i32
    return %c0_i32, %c0_i32_0 : i32, i32
  }
  func.func @transform_6(%arg0: i32) -> (i32, i32) {
    %c0_i32 = arith.constant 0 : i32
    %c0_i32_0 = arith.constant 0 : i32
    %c0_i32_1 = arith.constant 0 : i32
    return %c0_i32, %c0_i32_0 : i32, i32
  }
  func.func @transform_7(%arg0: i32) -> (i32, i32) {
    %c0_i32 = arith.constant 0 : i32
    %c0_i32_0 = arith.constant 0 : i32
    %c0_i32_1 = arith.constant 0 : i32
    return %c0_i32, %c0_i32_0 : i32, i32
  }
  func.func @transform_8(%arg0: i32) -> (i32, i32) {
    %c0_i32 = arith.constant 0 : i32
    %c0_i32_0 = arith.constant 0 : i32
    %c0_i32_1 = arith.constant 0 : i32
    return %c0_i32, %c0_i32_0 : i32, i32
  }
  func.func @transform_9(%arg0: i32) -> (i32, i32) {
    %c0_i32 = arith.constant 0 : i32
    %c0_i32_0 = arith.constant 0 : i32
    %c0_i32_1 = arith.constant 0 : i32
    return %c0_i32, %c0_i32_0 : i32, i32
  }
  func.func @transform_10(%arg0: i32) -> (i32, i32) {
    %c0_i32 = arith.constant 0 : i32
    %c0_i32_0 = arith.constant 0 : i32
    %c0_i32_1 = arith.constant 0 : i32
    return %c0_i32, %c0_i32_0 : i32, i32
  }
  func.func @transform_11(%arg0: i32) -> (i32, i32) {
    %c0_i32 = arith.constant 0 : i32
    %c0_i32_0 = arith.constant 0 : i32
    %c0_i32_1 = arith.constant 0 : i32
    return %c0_i32, %c0_i32_0 : i32, i32
  }
  func.func @transform_12(%arg0: i32) -> (i32, i32) {
    %c0_i32 = arith.constant 0 : i32
    %c0_i32_0 = arith.constant 0 : i32
    %c0_i32_1 = arith.constant 0 : i32
    return %c0_i32, %c0_i32_0 : i32, i32
  }
  func.func @transform_13(%arg0: i32) -> (i32, i32) {
    %c0_i32 = arith.constant 0 : i32
    %c0_i32_0 = arith.constant 0 : i32
    return %arg0, %c0_i32 : i32, i32
  }
}

</mosaic_0001>

<bundles_post_ra>
// kernel: extract.1
= control target key start
LH: loop header
LB: loop body
LE: loop exit
PB: predicated region body
PF: predicated region fallthrough
CT: control target
= control target key end

     0   :  { %18 = vsyncpa [#allocation3], 0  ;;  %s1367_s0 = inlined_call_operand.vmem [shape: f32[1,128], index: 0, kind: input, shape index: {}]   ;;  %s1368_s1 = inlined_call_operand.vmem [shape: f32[1,128], index: 1, kind: input, shape index: {}]   ;;  %s1369_s2 = inlined_call_operand.vmem [shape: f32[16,1], index: 2, kind: input, shape index: {}]   ;;  %s1370_s3 = inlined_call_operand.vmem [shape: f32[16,1], index: 3, kind: input, shape index: {}]   ;;  %s1371_s4 = inlined_call_operand.vmem [shape: f32[16,32], index: 4, kind: input, shape index: {}]   ;;  %s1372_s5 = inlined_call_operand.hbm [shape: f32[128,128], index: 5, kind: input, shape index: {}]   ;;  %s1373_s6 = inlined_call_operand.hbm [shape: f32[128,128], index: 6, kind: input, shape index: {}]   ;;  %s1374_s7 = inlined_call_operand.vmem [shape: f32[1,128], index: 7, kind: input, shape index: {}]   ;;  %s1375_s8 = inlined_call_operand.hbm [shape: f32[128,128], index: 8, kind: input, shape index: {}]   ;;  %s1376_s9 = inlined_call_operand.vmem [shape: f32[32,128], index: 9, kind: input, shape index: {}]   ;;  %s1377_s10 = inlined_call_operand.vmem [shape: f32[1,128], index: 10, kind: input, shape index: {}]   ;;  %s1378_s11 = inlined_call_operand.vmem [shape: f32[128,128], index: 11, kind: input, shape index: {}]   ;;  %s1379_s12 = inlined_call_operand.vmem [shape: f32[1,128], index: 12, kind: input, shape index: {}]   ;;  %s1380_s13 = inlined_call_operand.hbm [shape: f32[16,128], index: 13, kind: output, shape index: {}]  }
   0x1   :  { %19 = vsyncpa [#allocation6], 0 }
   0x2   :  { %20 = vsyncpa [#allocation4], 0  ;;  %s1124_s25 = smov [#allocation5]   ;;  %s1125_s27 = smov [#allocation2]  }
   0x3   :  { %s48_s26 = sshll.u32 %s1124_s25, 4  ;;  %s36_s28 = sshll.u32 %s1125_s27, 4  ;;  %s49_s26 = int_to_ptr.vmem [resolvable:$true] %s48_s26  ;;  %s1201_s28 = int_to_ptr.vmem [resolvable:$true] %s36_s28 }
   0x4   :  { %s1030_s14 = scalar_lea.hbm %s1373_s6, 2048 }
   0x5   :  { %p1031_p0 = scmp.ne.s32.totalorder %s1373_s6, %s1030_s14  ;;  %p1034_p1 = scmp.lt.u32.totalorder %s1030_s14, %s1373_s6 }
   0x7   :  { %p1036_p2 = pnand %p1034_p1, %p1031_p0 }
   0x9   :  { %1039 = shalt.err (!%p1036_p2)
}
   0xa   :  { %s1040_s19 = scalar_lea.vmem %s49_s26, 2048  ;;  %p1045_p4 = scmp.lt.s32.totalorder %s49_s26, %s49_s26 }
   0xb   :  { %p1041_p3 = scmp.ne.s32.totalorder %s49_s26, %s1040_s19  ;;  %p1046_p5 = scmp.lt.s32.totalorder %s1040_s19, %s1040_s19 }
   0xd   :  { %p1047_p6 = por %p1046_p5, %p1045_p4 }
   0xf   :  { %p1048_p7 = pnand %p1047_p6, %p1041_p3 }
  0x11   :  { %1051 = shalt.err (!%p1048_p7)
}
  0x12   :  { %s1126_s20 = smov 128   ;;  %s1127_s21 = smov 8  }
  0x13   :  { %54 = dma.hbm_to_vmem [thread:$0]  %s1373_s6, 2048, %s49_s26, [#allocation6], %s1126_s20, %s1126_s20, %s1127_s21  }
  0x14   :  { %s1052_s27 = scalar_lea.hbm %s1372_s5, 2048 }
  0x15   :  { %p1053_p8 = scmp.ne.s32.totalorder %s1372_s5, %s1052_s27  ;;  %p1056_p9 = scmp.lt.u32.totalorder %s1052_s27, %s1372_s5 }
  0x17   :  { %p1058_p10 = pnand %p1056_p9, %p1053_p8 }
  0x19   :  { %1061 = shalt.err (!%p1058_p10)
}
  0x1a   :  { %s1062_s16 = scalar_lea.vmem %s1201_s28, 2048  ;;  %p1067_p12 = scmp.lt.s32.totalorder %s1201_s28, %s1201_s28 }
  0x1b   :  { %p1063_p11 = scmp.ne.s32.totalorder %s1201_s28, %s1062_s16  ;;  %p1068_p13 = scmp.lt.s32.totalorder %s1062_s16, %s1062_s16 }
  0x1d   :  { %p1069_p0 = por %p1068_p13, %p1067_p12 }
  0x1f   :  { %p1070_p1 = pnand %p1069_p0, %p1063_p11 }
  0x21   :  { %1073 = shalt.err (!%p1070_p1)
}
  0x22   :  { %42 = dma.hbm_to_vmem [thread:$0]  %s1372_s5, 2048, %s1201_s28, [#allocation3], %s1126_s20, %s1126_s20, %s1127_s21  }
  0x23   :  { %s1128_s17 = smov [#allocation7]   ;;  %s1074_s23 = scalar_lea.hbm %s1375_s8, 2048 }
  0x24   :  { %s62_s18 = sshll.u32 %s1128_s17, 4  ;;  %p1075_p2 = scmp.ne.s32.totalorder %s1375_s8, %s1074_s23  ;;  %s63_s18 = int_to_ptr.vmem [resolvable:$true] %s62_s18 }
  0x25   :  { %p1078_p3 = scmp.lt.u32.totalorder %s1074_s23, %s1375_s8 }
  0x27   :  { %p1080_p4 = pnand %p1078_p3, %p1075_p2 }
  0x29   :  { %1083 = shalt.err (!%p1080_p4)
}
  0x2a   :  { %s1084_s30 = scalar_lea.vmem %s63_s18, 2048  ;;  %p1089_p6 = scmp.lt.s32.totalorder %s63_s18, %s63_s18 }
  0x2b   :  { %p1085_p5 = scmp.ne.s32.totalorder %s63_s18, %s1084_s30  ;;  %p1090_p7 = scmp.lt.s32.totalorder %s1084_s30, %s1084_s30 }
  0x2d   :  { %p1091_p8 = por %p1090_p7, %p1089_p6 }
  0x2f   :  { %p1092_p9 = pnand %p1091_p8, %p1085_p5 }
  0x31   :  { %1095 = shalt.err (!%p1092_p9)
}
  0x32   :  { %68 = dma.hbm_to_vmem [thread:$0]  %s1375_s8, 2048, %s63_s18, [#allocation6], %s1126_s20, %s1126_s20, %s1127_s21  }
  0x33   :  { %1118 = dma.done.wait [#allocation3], 2048  }
  0x34   :  { %1119 = vsyncadd [#allocation3], 4294965248 }
  0x35   :  { %1120 = dma.done.wait [#allocation6], 4096  }
  0x36   :  { %1121 = vsyncadd [#allocation6], 4294963200  ;;  %v1129_v0 = vmov 0   ;;  %v112_v1 = vld [vmem:[%s1370_s3] sm:$0xff]  ;;  %v113_v3 = vld [vmem:[%s1370_s3 + $0x8] sm:$0xff]  ;;  %vm353_vm0 = vcmask 261120  }
  0x37   :  { %1028 = vset.pattern.permute.xlu0 %v1129_v0  ;;  %1029 = vset.pattern.permute.xlu1 %v1129_v0  ;;  %v87_v2 = vld [vmem:[%s1369_s2] sm:$0xff]  ;;  %v153_v5 = vld [vmem:[#allocation5 + $0x8] sm:$0xff]  ;;  %v154_v8 = vld [vmem:[#allocation5 + $0x10] sm:$0xff] }
  0x38   :  { %122 = vperm.xlu0 %1028, %v112_v1   ;;  %97 = vperm.xlu1 %1029, %v87_v2   ;;  %v152_v4 = vld [vmem:[#allocation5] sm:$0xff]  ;;  %v88_v6 = vld [vmem:[%s1369_s2 + $0x8] sm:$0xff]  ;;  %v155_v9 = vld [vmem:[#allocation5 + $0x18] sm:$0xff] }
  0x39   :  { %v881_v7 = vpack.c.bf16 %v153_v5, %v152_v4  ;;  %v885_v10 = vpack.c.bf16 %v155_v9, %v154_v8  ;;  %v156_v11 = vld [vmem:[#allocation5 + $0x20] sm:$0xff]  ;;  %v157_v12 = vld [vmem:[#allocation5 + $0x28] sm:$0xff]  ;;  %v158_v14 = vld [vmem:[#allocation5 + $0x30] sm:$0xff] }
  0x3a   :  { %v889_v13 = vpack.c.bf16 %v157_v12, %v156_v11  ;;  %v159_v15 = vld [vmem:[#allocation5 + $0x38] sm:$0xff]  ;;  %v160_v17 = vld [vmem:[#allocation5 + $0x40] sm:$0xff]  ;;  %v161_v18 = vld [vmem:[#allocation5 + $0x48] sm:$0xff] }
  0x3b   :  { %882 = vmatprep.subr.bf16.mxu0 %v881_v7  ;;  %v893_v16 = vpack.c.bf16 %v159_v15, %v158_v14  ;;  %v897_v19 = vpack.c.bf16 %v161_v18, %v160_v17  ;;  %v162_v20 = vld [vmem:[#allocation5 + $0x50] sm:$0xff]  ;;  %v163_v21 = vld [vmem:[#allocation5 + $0x58] sm:$0xff]  ;;  %v164_v23 = vld [vmem:[#allocation5 + $0x60] sm:$0xff] }
  0x3c   :  { %127 = vperm.xlu0 %1028, %v113_v3   ;;  %102 = vperm.xlu1 %1029, %v88_v6   ;;  %v901_v22 = vpack.c.bf16 %v163_v21, %v162_v20  ;;  %v165_v24 = vld [vmem:[#allocation5 + $0x68] sm:$0xff]  ;;  %v166_v26 = vld [vmem:[#allocation5 + $0x70] sm:$0xff]  ;;  %v167_v27 = vld [vmem:[#allocation5 + $0x78] sm:$0xff] }
  0x3d   :  { %884 = vmatpush3.bf16.msra.mxu0 %v881_v7  ;;  %v905_v25 = vpack.c.bf16 %v165_v24, %v164_v23  ;;  %v909_v28 = vpack.c.bf16 %v167_v27, %v166_v26  ;;  %v136_v29 = vld [vmem:[#allocation2] sm:$0xff]  ;;  %v137_v30 = vld [vmem:[#allocation2 + $0x8] sm:$0xff]  ;;  %v351_v34 = vld [vmem:[%s1376_s9 + $0x10] sm:$0xff] }
  0x3e   :  { %886 = vmatprep.subr.bf16.mxu0 %v885_v10  ;;  %v1265_v31 = vpack.c.bf16 %v137_v30, %v136_v29  ;;  %v349_v32 = vld [vmem:[%s1376_s9] sm:$0xff]  ;;  %v350_v33 = vld [vmem:[%s1376_s9 + $0x8] sm:$0xff]  ;;  %v352_v36 = vld [vmem:[%s1376_s9 + $0x18] sm:$0xff] }
  0x3f   :  { %v945_v35 = vpack.c.bf16 %v350_v33, %v349_v32  ;;  %v347_v37 = vld [vmem:[%s1371_s4] sm:$0xff]  ;;  %v949_v38 = vpack.c.bf16 %v352_v36, %v351_v34  ;;  %v332_v40 = vld [vmem:[#allocation7 + $0x8] sm:$0xff]  ;;  %v333_v42 = vld [vmem:[#allocation7 + $0x10] sm:$0xff] }
  0x40   :  { %808 = vmatprep.mubr.msk.f32.mxu1 %vm353_vm0, %v347_v37  ;;  %v331_v39 = vld [vmem:[#allocation7] sm:$0xff]  ;;  %v334_v43 = vld [vmem:[#allocation7 + $0x18] sm:$0xff]  ;;  %v348_v44 = vld [vmem:[%s1371_s4 + $0x8] sm:$0xff] }
  0x41   :  { %888 = vmatpush3.bf16.msra.mxu0 %v885_v10  ;;  %946 = vmatprep.subr.bf16.mxu1 %v945_v35  ;;  %v953_v41 = vpack.c.bf16 %v332_v40, %v331_v39  ;;  %v957_v45 = vpack.c.bf16 %v334_v43, %v333_v42  ;;  %v335_v46 = vld [vmem:[#allocation7 + $0x20] sm:$0xff]  ;;  %v336_v47 = vld [vmem:[#allocation7 + $0x28] sm:$0xff]  ;;  %v337_v49 = vld [vmem:[#allocation7 + $0x30] sm:$0xff] }
  0x42   :  { %890 = vmatprep.subr.bf16.mxu0 %v889_v13  ;;  %948 = vmatpush3.bf16.msra.mxu1 %v945_v35  ;;  %v961_v48 = vpack.c.bf16 %v336_v47, %v335_v46  ;;  %v338_v50 = vld [vmem:[#allocation7 + $0x38] sm:$0xff]  ;;  %v339_v52 = vld [vmem:[#allocation7 + $0x40] sm:$0xff]  ;;  %v340_v53 = vld [vmem:[#allocation7 + $0x48] sm:$0xff] }
  0x43   :  { %950 = vmatprep.subr.bf16.mxu1 %v949_v38  ;;  %v965_v51 = vpack.c.bf16 %v338_v50, %v337_v49  ;;  %v969_v54 = vpack.c.bf16 %v340_v53, %v339_v52  ;;  %v341_v55 = vld [vmem:[#allocation7 + $0x50] sm:$0xff]  ;;  %v342_v56 = vld [vmem:[#allocation7 + $0x58] sm:$0xff]  ;;  %v644_v58 = vld [vmem:[%s1368_s1] ss:$0 sm:$0xff] }
  0x44   :  { %v973_v57 = vpack.c.bf16 %v342_v56, %v341_v55  ;;  %v641_v59 = vld [vmem:[%s1367_s0] ss:$0 sm:$0xff]  ;;  %v138_v2 = vld [vmem:[#allocation2 + $0x10] sm:$0xff]  ;;  %v139_v3 = vld [vmem:[#allocation2 + $0x18] sm:$0xff] }
  0x45   :  { %892 = vmatpush3.bf16.msra.mxu0 %v889_v13  ;;  %v917_v7 = vpack.c.bf16 %v139_v3, %v138_v2  ;;  %v140_v8 = vld [vmem:[#allocation2 + $0x20] sm:$0xff]  ;;  %v141_v9 = vld [vmem:[#allocation2 + $0x28] sm:$0xff]  ;;  %v142_v11 = vld [vmem:[#allocation2 + $0x30] sm:$0xff] }
  0x46   :  { %894 = vmatprep.subr.bf16.mxu0 %v893_v16  ;;  %952 = vmatpush3.bf16.msra.mxu1 %v949_v38  ;;  %v921_v10 = vpack.c.bf16 %v141_v9, %v140_v8  ;;  %v143_v12 = vld [vmem:[#allocation2 + $0x38] sm:$0xff]  ;;  %v144_v14 = vld [vmem:[#allocation2 + $0x40] sm:$0xff]  ;;  %v145_v15 = vld [vmem:[#allocation2 + $0x48] sm:$0xff] }
  0x47   :  { %954 = vmatprep.subr.bf16.mxu1 %v953_v41  ;;  %v925_v13 = vpack.c.bf16 %v143_v12, %v142_v11  ;;  %v146_v17 = vld [vmem:[#allocation2 + $0x50] sm:$0xff]  ;;  %v147_v18 = vld [vmem:[#allocation2 + $0x58] sm:$0xff]  ;;  %v148_v20 = vld [vmem:[#allocation2 + $0x60] sm:$0xff] }
  0x48   :  { %v149_v21 = vld [vmem:[#allocation2 + $0x68] sm:$0xff]  ;;  %v150_v23 = vld [vmem:[#allocation2 + $0x70] sm:$0xff]  ;;  %v151_v24 = vld [vmem:[#allocation2 + $0x78] sm:$0xff] }
  0x49   :  { %896 = vmatpush3.bf16.msra.mxu0 %v893_v16  ;;  %809 = vmatmul.mubr.msk.f32.vlgmr.msra.gmra.mrb[0].mxu1 %vm353_vm0, %v348_v44  ;;  %v929_v16 = vpack.c.bf16 %v145_v15, %v144_v14  ;;  %v343_v29 = vld [vmem:[#allocation7 + $0x60] sm:$0xff]  ;;  %v344_v30 = vld [vmem:[#allocation7 + $0x68] sm:$0xff]  ;;  %v345_v32 = vld [vmem:[#allocation7 + $0x70] sm:$0xff] }
  0x4a   :  { %898 = vmatprep.subr.bf16.mxu0 %v897_v19  ;;  %956 = vmatpush3.bf16.msra.mxu1 %v953_v41  ;;  %v346_v33 = vld [vmem:[#allocation7 + $0x78] sm:$0xff]  ;;  %v521_v35 = vld [vmem:[%s1378_s11] sm:$0xff]  ;;  %v522_v36 = vld [vmem:[%s1378_s11 + $0x8] sm:$0xff] }
  0x4b   :  { %958 = vmatprep.subr.bf16.mxu1 %v957_v45  ;;  %v981_v34 = vpack.c.bf16 %v346_v33, %v345_v32  ;;  %v985_v37 = vpack.c.bf16 %v522_v36, %v521_v35  ;;  %v647_v38 = vld [vmem:[%s1374_s7] ss:$0 sm:$0xff]  ;;  %v524_v46 = vld [vmem:[%s1378_s11 + $0x18] sm:$0xff]  ;;  %v527_v53 = vld [vmem:[%s1378_s11 + $0x30] sm:$0xff] }
  0x4c   :  { %v525_v50 = vld [vmem:[%s1378_s11 + $0x20] sm:$0xff]  ;;  %v536_v2 = vld [vmem:[%s1378_s11 + $0x78] sm:$0xff] }
  0x4d   :  { %900 = vmatpush3.bf16.msra.mxu0 %v897_v19  ;;  %v933_v19 = vpack.c.bf16 %v147_v18, %v146_v17  ;;  %v529_v56 = vld [vmem:[%s1378_s11 + $0x40] sm:$0xff] }
  0x4e   :  { %902 = vmatprep.subr.bf16.mxu0 %v901_v22  ;;  %960 = vmatpush3.bf16.msra.mxu1 %v957_v45  ;;  %v523_v45 = vld [vmem:[%s1378_s11 + $0x10] sm:$0xff]  ;;  %v651_v11 = vld [vmem:[%s1379_s12] ss:$0 sm:$0xff] }
  0x4f   :  { %962 = vmatprep.subr.bf16.mxu1 %v961_v48  ;;  %v989_v49 = vpack.c.bf16 %v524_v46, %v523_v45 }
  0x51   :  { %904 = vmatpush3.bf16.msra.mxu0 %v901_v22  ;;  %v937_v22 = vpack.c.bf16 %v149_v21, %v148_v20 }
  0x52   :  { %906 = vmatprep.subr.bf16.mxu0 %v905_v25  ;;  %964 = vmatpush3.bf16.msra.mxu1 %v961_v48 }
  0x53   :  { %966 = vmatprep.subr.bf16.mxu1 %v965_v51 }
  0x55   :  { %908 = vmatpush3.bf16.msra.mxu0 %v905_v25  ;;  %v941_v25 = vpack.c.bf16 %v151_v24, %v150_v23 }
  0x56   :  { %910 = vmatprep.subr.bf16.mxu0 %v909_v28  ;;  %968 = vmatpush3.bf16.msra.mxu1 %v965_v51  ;;  %v526_v51 = vld [vmem:[%s1378_s11 + $0x28] sm:$0xff] }
  0x57   :  { %970 = vmatprep.subr.bf16.mxu1 %v969_v54  ;;  %v993_v52 = vpack.c.bf16 %v526_v51, %v525_v50 }
  0x59   :  { %912 = vmatpush3.bf16.msra.mxu0 %v909_v28 }
  0x5a   :  { %914 = vmatprep.subr.bf16.mxu0 %v1265_v31  ;;  %972 = vmatpush3.bf16.msra.mxu1 %v969_v54  ;;  %v528_v54 = vld [vmem:[%s1378_s11 + $0x38] sm:$0xff] }
  0x5b   :  { %974 = vmatprep.subr.bf16.mxu1 %v973_v57  ;;  %v997_v55 = vpack.c.bf16 %v528_v54, %v527_v53 }
  0x5e   :  { %976 = vmatpush3.bf16.msra.mxu1 %v973_v57  ;;  %v530_v57 = vld [vmem:[%s1378_s11 + $0x48] sm:$0xff] }
  0xb7   :  { %v123_v60 = vpop.permute.xlu0 %122  ;;  %v98_v62 = vpop.permute.xlu1 %97 }
  0xb8   :  { %v130_v61 = vsub.f32 %v644_v58, %v123_v60  ;;  %v105_v63 = vsub.f32 %v641_v59, %v98_v62  ;;  %v532_v60 = vld [vmem:[%s1378_s11 + $0x58] sm:$0xff]  ;;  %v533_v62 = vld [vmem:[%s1378_s11 + $0x60] sm:$0xff] }
  0xba   :  { %v645_v0 = vclamps-f32 %v130_v61, 2.0  ;;  %v642_v5 = vclamps-f32 %v105_v63, 2.0  ;;  %v534_v63 = vld [vmem:[%s1378_s11 + $0x68] sm:$0xff] }
  0xbb   :  { %v128_v1 = vpop.permute.xlu0 %127  ;;  %v103_v26 = vpop.permute.xlu1 %102 }
  0xbc   :  { %v131_v4 = vsub.f32 %v644_v58, %v128_v1  ;;  %762 = vmatprep.mubr.f32.mxu0 %v645_v0  ;;  %v106_v27 = vsub.f32 %v641_v59, %v103_v26  ;;  %v1001_v58 = vpack.c.bf16 %v530_v57, %v529_v56  ;;  %v531_v59 = vld [vmem:[%s1378_s11 + $0x50] sm:$0xff]  ;;  %v1009_v0 = vpack.c.bf16 %v534_v63, %v533_v62 }
  0xbd   :  { %v1005_v61 = vpack.c.bf16 %v532_v60, %v531_v59  ;;  %v535_v1 = vld [vmem:[%s1378_s11 + $0x70] sm:$0xff]  ;;  %s1130_s11 = smov [#allocation8]  }
  0xbe   :  { %v646_v6 = vclamps-f32 %v131_v4, 2.0  ;;  %v643_v28 = vclamps-f32 %v106_v27, 2.0  ;;  %v1013_v3 = vpack.c.bf16 %v536_v2, %v535_v1  ;;  %v650_v4 = vld [vmem:[%s1377_s10] ss:$0 sm:$0xff]  ;;  %s628_s23 = sshll.u32 %s1130_s11, 4  ;;  %s629_s23 = int_to_ptr.vmem [resolvable:$true] %s628_s23 }
  0xbf   :  { %s1096_s10 = scalar_lea.vmem %s629_s23, 256  ;;  %p1101_p11 = scmp.lt.s32.totalorder %s629_s23, %s629_s23 }
  0xc0   :  { %763 = vmatmul.mubr.f32.vlgmr.msra.gmra.mrb[0].mxu0 %v646_v6  ;;  %p1097_p10 = scmp.ne.s32.totalorder %s629_s23, %s1096_s10  ;;  %p1102_p12 = scmp.lt.s32.totalorder %s1096_s10, %s1096_s10 }
  0xc1   :  { %916 = vmatpush3.bf16.msra.mxu0 %v1265_v31  ;;  %797 = vmatprep.mubr.f32.mxu0 %v642_v5  ;;  %v977_v31 = vpack.c.bf16 %v344_v30, %v343_v29 }
  0xc2   :  { %918 = vmatprep.subr.bf16.mxu0 %v917_v7  ;;  %p1103_p13 = por %p1102_p12, %p1101_p11 }
  0xc3   :  { %978 = vmatprep.subr.bf16.mxu1 %v977_v31 }
  0xc4   :  { %980 = vmatpush3.bf16.msra.mxu1 %v977_v31  ;;  %p1104_p0 = pnand %p1103_p13, %p1097_p10 }
  0xc5   :  { %920 = vmatpush3.bf16.msra.mxu0 %v917_v7  ;;  %982 = vmatprep.subr.bf16.mxu1 %v981_v34 }
  0xc6   :  { %922 = vmatprep.subr.bf16.mxu0 %v921_v10 }
  0xc8   :  { %984 = vmatpush3.bf16.msra.mxu1 %v981_v34 }
  0xc9   :  { %924 = vmatpush3.bf16.msra.mxu0 %v921_v10  ;;  %986 = vmatprep.subr.bf16.mxu1 %v985_v37 }
  0xca   :  { %926 = vmatprep.subr.bf16.mxu0 %v925_v13 }
  0xcd   :  { %928 = vmatpush3.bf16.msra.mxu0 %v925_v13 }
  0xce   :  { %930 = vmatprep.subr.bf16.mxu0 %v929_v16 }
  0xd1   :  { %932 = vmatpush3.bf16.msra.mxu0 %v929_v16 }
  0xd2   :  { %934 = vmatprep.subr.bf16.mxu0 %v933_v19 }
  0xd5   :  { %936 = vmatpush3.bf16.msra.mxu0 %v933_v19 }
  0xd6   :  { %938 = vmatprep.subr.bf16.mxu0 %v937_v22 }
  0xd9   :  { %940 = vmatpush3.bf16.msra.mxu0 %v937_v22 }
  0xda   :  { %942 = vmatprep.subr.bf16.mxu0 %v941_v25 }
  0xdd   :  { %944 = vmatpush3.bf16.msra.mxu0 %v941_v25 }
  0xe0   :  { %798 = vmatmul.mubr.f32.vlgmr.msra.gmra.mrb[0].mxu0 %v643_v28 }
 0x1b3   :  { %v799_v39 = vpop.f32.mrb[0].mxu0 }
 0x1b4   :  { %v326_v40 = vadd.f32 %v799_v39, %v647_v38  ;;  %v309_v41 = vpop.f32.mrb[1].mxu0 }
 0x1b5   :  { %v325_v42 = vadd.f32 %v647_v38, %v309_v41 }
 0x1b6   :  { %v328_v43 = vmul.f32 0.01, %v326_v40 }
 0x1b7   :  { %v327_v44 = vmul.f32 0.01, %v325_v42 }
 0x1b8   :  { %v330_v48 = vmax.f32 %v326_v40, %v328_v43 }
 0x1b9   :  { %v329_v47 = vmax.f32 %v325_v42, %v327_v44 }
 0x1bb   :  { %843 = vmatprep.mubr.f32.mxu1 %v329_v47 }
 0x1bc   :  { %844 = vmatmul.mubr.f32.vlgmr.msra.gmra.mrb[0].mxu1 %v330_v48 }
 0x1bd   :  { %988 = vmatpush3.bf16.msra.mxu1 %v985_v37 }
 0x1be   :  { %990 = vmatprep.subr.bf16.mxu1 %v989_v49 }
 0x1c1   :  { %992 = vmatpush3.bf16.msra.mxu1 %v989_v49 }
 0x1c2   :  { %994 = vmatprep.subr.bf16.mxu1 %v993_v52 }
 0x1c5   :  { %996 = vmatpush3.bf16.msra.mxu1 %v993_v52 }
 0x1c6   :  { %998 = vmatprep.subr.bf16.mxu1 %v997_v55 }
 0x1c9   :  { %1000 = vmatpush3.bf16.msra.mxu1 %v997_v55 }
 0x1ca   :  { %1002 = vmatprep.subr.bf16.mxu1 %v1001_v58 }
 0x1cd   :  { %1004 = vmatpush3.bf16.msra.mxu1 %v1001_v58 }
 0x1ce   :  { %1006 = vmatprep.subr.bf16.mxu1 %v1005_v61 }
 0x1d1   :  { %1008 = vmatpush3.bf16.msra.mxu1 %v1005_v61 }
 0x1d2   :  { %1010 = vmatprep.subr.bf16.mxu1 %v1009_v0 }
 0x1d5   :  { %1012 = vmatpush3.bf16.msra.mxu1 %v1009_v0 }
 0x1d6   :  { %1014 = vmatprep.subr.bf16.mxu1 %v1013_v3 }
 0x1d9   :  { %1016 = vmatpush3.bf16.msra.mxu1 %v1013_v3 }
 0x28f   :  { %v845_v5 = vpop.f32.mrb[0].mxu1 }
 0x290   :  { %v518_v6 = vadd.f32 %v845_v5, %v650_v4  ;;  %v501_v7 = vpop.f32.mrb[1].mxu1 }
 0x291   :  { %v517_v8 = vadd.f32 %v650_v4, %v501_v7 }
 0x292   :  { %v520_v10 = vmax.f32 %v518_v6, 0.0 }
 0x293   :  { %v519_v9 = vmax.f32 %v517_v8, 0.0 }
 0x295   :  { %878 = vmatprep.mubr.f32.mxu1 %v519_v9 }
 0x296   :  { %879 = vmatmul.mubr.f32.vlgmr.msra.gmra.mrb[2].mxu1 %v520_v10 }
 0x369   :  { %v880_v12 = vpop.f32.mrb[2].mxu1 }
 0x36a   :  { %v616_v13 = vadd.f32 %v880_v12, %v651_v11  ;;  %v610_v14 = vpop.f32.mrb[3].mxu1 }
 0x36b   :  { %v611_v15 = vadd.f32 %v651_v11, %v610_v14 }
 0x36c   :  { %v620_v16 = vmax.f32 %v616_v13, 0.0 }
 0x36d   :  { %v619_v17 = vmax.f32 %v611_v15, 0.0 }
 0x36e   :  { %622 = vst [vmem:[#allocation8 + $0x8] sm:$0xff] %v620_v16 }
 0x36f   :  { %621 = vst [vmem:[#allocation8] sm:$0xff] %v619_v17 }
 0x370   :  { %1107 = shalt.err (!%p1104_p0)
}
 0x371   :  { %s1108_s25 = scalar_lea.hbm %s1380_s13, 256 }
 0x372   :  { %p1109_p1 = scmp.ne.s32.totalorder %s1380_s13, %s1108_s25  ;;  %p1112_p2 = scmp.lt.u32.totalorder %s1108_s25, %s1380_s13 }
 0x374   :  { %p1114_p3 = pnand %p1112_p2, %p1109_p1 }
 0x376   :  { %1117 = shalt.err (!%p1114_p3)
}
 0x377   :  { %634 = dma.vmem_to_hbm [thread:$0]  %s629_s23, 256, %s1380_s13, [#allocation4], %s1126_s20, %s1126_s20, %s1127_s21  }
 0x378   :  { %1122 = dma.done.wait [#allocation4], 256  }
 0x379   :  { %1123 = vsyncadd [#allocation4], 4294967040 }
 0x37a   :  { %638 = vsyncpa [#allocation3], 1 }
 0x37b   :  { %639 = vsyncpa [#allocation6], 1 }
 0x37c   :  { %640 = vsyncpa [#allocation4], 1 }

</bundles_post_ra>
